<compile_context>
chip_gen: v7x
topology: tpu7x:2x2x1
jax: 0.10.0
libtpu: 0.0.40
codegen_flags: <defaults>
</compile_context>

<pallas_src>
import jax
import jax.numpy as jnp
from jax.experimental import pallas as pl
from jax.experimental.pallas import tpu as pltpu


def channel_proj_kernel(gamma_ref, x_ref, o_ref):
    # gamma_ref: SMEM ref, shape (1,) float32
    # x_ref / o_ref: VMEM tiles of shape (TB, C, N), float32
    x_f32 = x_ref[...]                    # residual path stays f32
    x_bf = x_f32.astype(jnp.bfloat16)     # MXU operands in bf16

    # Channel attention map (TB, C, C): contract over N on both operands
    # (no transpose materialized), accumulate in f32 on the MXU.
    att = jnp.einsum(
        "bcn,bdn->bcd", x_bf, x_bf, preferred_element_type=jnp.float32
    )

    # Numerically-stable softmax along last dim (matches Softmax(dim=-1)).
    att = att - jnp.max(att, axis=-1, keepdims=True)
    p = jnp.exp(att)
    score = p * pl.reciprocal(jnp.sum(p, axis=-1, keepdims=True), approx=True)

    # Weighted sum of value (= x): (TB, C, C) @ (TB, C, N) -> (TB, C, N)
    out = jnp.einsum(
        "bcd,bdn->bcn",
        score.astype(jnp.bfloat16),
        x_bf,
        preferred_element_type=jnp.float32,
    )

    gamma = gamma_ref[0]
    o_ref[...] = (gamma * out + x_f32).astype(o_ref.dtype)


def _choose_tb(B, C, N, vmem_budget_bytes=32 << 20):
    """Pick how many (C, N) slabs to process per grid step."""
    per_batch = (
        4 * C * N * 4      # pipeline in + out, double-buffered, f32
        + C * N * 2        # bf16 copy of x
        + 3 * C * C * 4    # att / p / score temporaries (f32)
        + C * N * 4        # f32 out temporary
    )
    tb = max(1, vmem_budget_bytes // max(per_batch, 1))
    tb = min(tb, B)
    # Keep the grid >= 2 steps when possible (v7x has 2 TensorCores/chip).
    while tb > 1 and (B + tb - 1) // tb < 2:
        tb //= 2
    # Prefer a TB that divides B evenly (no partially-masked batch blocks).
    while tb > 1 and B % tb != 0:
        tb -= 1
    return max(tb, 1)


def channel_projection(x, gamma):
    """x: (B, C, N) float32; gamma: scalar parameter, shape (1,) float32."""
    B, C, N = x.shape

    # Pad N up to a lane-dense multiple of 128 only when necessary.
    n_pad = (-N) % 128
    x_in = jnp.pad(x, ((0, 0), (0, 0), (0, n_pad))) if n_pad else x
    Np = N + n_pad

    tb = _choose_tb(B, C, Np)
    grid = (pl.cdiv(B, tb),)

    out = pl.pallas_call(
        channel_proj_kernel,
        out_shape=jax.ShapeDtypeStruct((B, C, Np), x.dtype),
        grid=grid,
        in_specs=[
            # gamma: whole (1,) array resident in SMEM, no tiling.
            pl.BlockSpec(memory_space=pltpu.MemorySpace.SMEM),
            pl.BlockSpec((tb, C, Np), lambda b: (b, 0, 0)),
        ],
        out_specs=pl.BlockSpec((tb, C, Np), lambda b: (b, 0, 0)),
        compiler_params=pltpu.CompilerParams(
            dimension_semantics=("parallel",),
            vmem_limit_bytes=48 << 20,   # explicit; headroom on v7x (64 MiB)
        ),
    )(gamma, x_in)

    return out[..., :N] if n_pad else out


def channel_projection_ref(x, gamma):
    att = jnp.einsum("bcn,bdn->bcd", x, x)
    score = jax.nn.softmax(att, axis=-1)
    out = jnp.einsum("bcd,bdn->bcn", score, x)
    return gamma[0] * out + x


if __name__ == "__main__":
    key = jax.random.PRNGKey(0)
    # Small shapes consistent with the module: (batch, channels, H*W).
    B, C, N = 2, 8, 256
    # Scale down so the softmax is non-trivial (not a near-identity map).
    x = 0.1 * jax.random.normal(key, (B, C, N), dtype=jnp.float32)

    # Parameter init exactly as in the module: gamma = torch.zeros(1)
    gamma = jnp.zeros((1,), dtype=jnp.float32)
    out = jax.block_until_ready(channel_projection(x, gamma))
    ref = channel_projection_ref(x, gamma)
    assert out.shape == (B, C, N)
    # gamma == 0  =>  output is exactly the residual x.
    assert jnp.allclose(out, ref, atol=1e-5, rtol=1e-5)

    # Non-zero gamma exercises the full attention path; tolerance loosened
    # slightly for bf16 MXU operands (f32 accumulation).
    gamma2 = jnp.array([0.7], dtype=jnp.float32)
    out2 = jax.block_until_ready(channel_projection(x, gamma2))
    ref2 = channel_projection_ref(x, gamma2)
    assert jnp.allclose(out2, ref2, atol=2e-2, rtol=2e-2)

    print("KERNEL_OK")
</pallas_src>

<mosaic_0001>
module attributes {stable_mosaic.version = 11 : i64} {
  func.func @channel_proj_kernel(%arg0: i32, %arg1: memref<1xf32, #tpu.memory_space<smem>>, %arg2: memref<1x8x256xf32, #tpu.memory_space<vmem>>, %arg3: memref<1x8x256xf32, #tpu.memory_space<vmem>>) attributes {dimension_semantics = [#tpu.dimension_semantics<parallel>], iteration_bounds = array<i64: 2>, scalar_prefetch = 0 : i64, scratch_operands = 0 : i64, tpu.core_type = #tpu.core_type<tc>, window_params = [{transform_indices = @transform_0, window_bounds = array<i64: 1>}, {transform_indices = @transform_1, window_bounds = array<i64: 1, 8, 256>}, {transform_indices = @transform_2, window_bounds = array<i64: 1, 8, 256>}]} {
    %c0 = arith.constant 0 : index
    %c0_0 = arith.constant 0 : index
    %c0_1 = arith.constant 0 : index
    %0 = vector.load %arg2[%c0, %c0_0, %c0_1] : memref<1x8x256xf32, #tpu.memory_space<vmem>>, vector<1x8x256xf32>
    %1 = arith.truncf %0 : vector<1x8x256xf32> to vector<1x8x256xbf16>
    "tpu.trace_start"() <{level = 10 : i32, message = "bcn,bdn->bcd"}> : () -> ()
    %cst = arith.constant dense<0.000000e+00> : vector<1x8x8xf32>
    %2 = tpu.matmul %1, %1, %cst {dimension_numbers = #tpu.dot_dimension_numbers<[2], [2], [1], [1], [0, 0, 0, 1, 1, 1], [0], [0]>} : vector<1x8x256xbf16>, vector<1x8x256xbf16>, vector<1x8x8xf32> -> vector<1x8x8xf32>
    "tpu.trace_stop"() : () -> ()
    %cst_2 = arith.constant dense<0xFF800000> : vector<1x8xf32>
    %3 = vector.multi_reduction <maximumf>, %2, %cst_2 [2] : vector<1x8x8xf32> to vector<1x8xf32>
    %4 = vector.shape_cast %3 : vector<1x8xf32> to vector<1x8x1xf32>
    %5 = vector.broadcast %4 : vector<1x8x1xf32> to vector<1x8x8xf32>
    %6 = arith.subf %2, %5 : vector<1x8x8xf32>
    %7 = math.exp %6 : vector<1x8x8xf32>
    %cst_3 = arith.constant dense<0.000000e+00> : vector<1x8xf32>
    %8 = vector.multi_reduction <add>, %7, %cst_3 [2] : vector<1x8x8xf32> to vector<1x8xf32>
    %9 = vector.shape_cast %8 : vector<1x8xf32> to vector<1x8x1xf32>
    %10 = tpu.reciprocal %9 {approx = true} : vector<1x8x1xf32> -> vector<1x8x1xf32>
    %11 = vector.broadcast %10 : vector<1x8x1xf32> to vector<1x8x8xf32>
    %12 = arith.mulf %7, %11 : vector<1x8x8xf32>
    %13 = arith.truncf %12 : vector<1x8x8xf32> to vector<1x8x8xbf16>
    "tpu.trace_start"() <{level = 10 : i32, message = "bcd,bdn->bcn"}> : () -> ()
    %cst_4 = arith.constant dense<0.000000e+00> : vector<1x8x256xf32>
    %14 = tpu.matmul %13, %1, %cst_4 {dimension_numbers = #tpu.dot_dimension_numbers<[2], [1], [1], [2], [0, 0, 0, 1, 1, 2], [0], [0]>} : vector<1x8x8xbf16>, vector<1x8x256xbf16>, vector<1x8x256xf32> -> vector<1x8x256xf32>
    "tpu.trace_stop"() : () -> ()
    %c0_5 = arith.constant 0 : index
    %15 = memref.load %arg1[%c0_5] : memref<1xf32, #tpu.memory_space<smem>>
    %16 = vector.broadcast %15 : f32 to vector<1x8x256xf32>
    %17 = arith.mulf %16, %14 : vector<1x8x256xf32>
    %18 = arith.addf %17, %0 : vector<1x8x256xf32>
    %c0_6 = arith.constant 0 : index
    %c0_7 = arith.constant 0 : index
    %c0_8 = arith.constant 0 : index
    %19 = vector.load %arg3[%c0_6, %c0_7, %c0_8] : memref<1x8x256xf32, #tpu.memory_space<vmem>>, vector<1x8x256xf32>
    tpu.vector_store %arg3[%c0_6, %c0_7, %c0_8], %18 {strides = array<i32>} : memref<1x8x256xf32, #tpu.memory_space<vmem>>, vector<1x8x256xf32>,
    return
  }
  func.func @transform_0(%arg0: i32) -> i32 {
    %c0_i32 = arith.constant 0 : i32
    %c0_i32_0 = arith.constant 0 : i32
    return %c0_i32 : i32
  }
  func.func @transform_1(%arg0: i32) -> (i32, i32, i32) {
    %c0_i32 = arith.constant 0 : i32
    %c0_i32_0 = arith.constant 0 : i32
    %c0_i32_1 = arith.constant 0 : i32
    return %arg0, %c0_i32, %c0_i32_0 : i32, i32, i32
  }
  func.func @transform_2(%arg0: i32) -> (i32, i32, i32) {
    %c0_i32 = arith.constant 0 : i32
    %c0_i32_0 = arith.constant 0 : i32
    %c0_i32_1 = arith.constant 0 : i32
    return %arg0, %c0_i32, %c0_i32_0 : i32, i32, i32
  }
}

</mosaic_0001>

<bundles_post_ra>
// kernel: tpu_custom_call.1
= control target key start
LH: loop header
LB: loop body
LE: loop exit
PB: predicated region body
PF: predicated region fallthrough
CT: control target
= control target key end

     0   :  { %s719_s0 = inlined_call_operand.<no memory space> [shape: f32[1], index: 0, kind: input, shape index: {}]   ;;  %s720_s1 = inlined_call_operand.hbm [shape: f32[2,8,256], index: 1, kind: input, shape index: {}]   ;;  %s721_s2 = inlined_call_operand.hbm [shape: f32[2,8,256], index: 2, kind: output, shape index: {}]  }
   0x1   :  { %7 = sst [smem:[#allocation2]] %s719_s0 }
   0x2   :  { %8 = vsyncpa [#allocation4], 0 }
   0x3   :  { %10 = vsyncpa [#allocation4 + $0x1], 0 }
   0x4   :  { %11 = vsyncpa [#allocation5], 0 }
   0x5   :  { %13 = vsyncpa [#allocation5 + $0x1], 0  ;;  %s551_s11 = smov 0   ;;  %s553_s12 = smov 0  }
   0x6   :  { %s555_s13 = smov 0   ;;  %s557_s14 = smov 0  }
   0x7 LB: > { %s572_s0 = sadd.s32 4294967295, %s528_s14   ;;  %s363_s15 = sadd.s32 4294967294, %s528_s14   ;;  %s528_s14 = sphi %s557_s14, %s736_s14   ;;  %s524_s13 = sphi %s555_s13, %s735_s13   ;;  %s520_s12 = sphi %s553_s12, %s734_s12   ;;  %s516_s11 = sphi %s551_s11, %s733_s11  }
   0x8   : > { %s576_s16 = sadd.s32 1, %s528_s14   ;;  %s47_s17 = sadd.s32 1, %s524_s13 }
   0x9   : > { %s44_s18 = ssub.s32 %s528_s14, %s576_s16  ;;  %p54_p0 = scmp.ne.s32.totalorder %s524_s13, %s520_s12 }
   0xa   : > { %p45_p1 = scmp.eq.s32.totalorder %s44_s18, 0  ;;  %p55_p2 = scmp.eq.s32.totalorder %s528_s14, 0 }
   0xb   : > { %p60_p3 = scmp.ne.s32.totalorder %s520_s12, %s516_s11  ;;  %p61_p4 = scmp.eq.s32.totalorder %s572_s0, 0 }
   0xc   : > { %s588_s19 = scalar_select %p45_p1, %s524_s13, %s47_s17  }
   0xd   : > { %p590_p5 = por %p55_p2, %p54_p0  ;;  %p594_p6 = por %p61_p4, %p60_p3 }
   0xe   : > { %p84_p7 = scmp.eq.s32.totalorder %s572_s0, 1  ;;  %p90_p8 = scmp.eq.s32.totalorder %s363_s15, 1 }
   0xf   : > { %p393_p10 = scmp.lt.s32.totalorder %s528_s14, 2  ;;  %s113_s24 = sand.u32 1, %s524_s13  }
  0x10   : > { %p601_p11 = por %p84_p7, %p54_p0  ;;  %p605_p12 = por %p90_p8, %p60_p3 }
  0x11   : > { %s379_s25 = sshll.u32 %s528_s14, 8  ;;  %s366_s26 = sshll.u32 %s113_s24, 4 }
  0x12   : > { %s725_s22 = scalar_select %p601_p11, 1, 0 }
  0x13   : > { %s726_s23 = scalar_select %p605_p12, 1, 0 }
  0x14   : > { %s614_s29 = scalar_lea.hbm %s720_s1, %s379_s25  ;;  %s117_s30 = scalar_lea.vmem [#allocation3], %s366_s26 }
  0x15   : > { %s125_s3 = sshll.u32 %s117_s30, 4  ;;  %p618_p13 = pnand %p393_p10, %p590_p5  ;;  %s622_s3 = int_to_ptr.vmem [resolvable:$true] %s125_s3 }
  0x16   : > { %s114_s5 = scalar_lea.sflag [#allocation4], %s113_s24  ;;  %s432_s6 = scalar_lea.hbm %s614_s29, 256 }
  0x17   : > { %p433_p2 = scmp.ne.s32.totalorder %s614_s29, %s432_s6  ;;  %p434_p3 = pneg %p618_p13 }
  0x18   : > { %s437_s9 = scalar_lea.hbm %s720_s1, 512  ;;  %p438_p5 = scmp.lt.u32.totalorder %s614_s29, %s720_s1 }
  0x19   : > { %p435_p4 = pnand %p434_p3, %p433_p2  ;;  %p439_p8 = scmp.lt.u32.totalorder %s437_s9, %s432_s6 }
  0x1a   : > { %p441_p9 = scmp.lt.u32.totalorder %s432_s6, %s614_s29 }
  0x1b   : > { %p436_p7 = pneg %p435_p4  ;;  %p440_p10 = por %p439_p8, %p438_p5 }
  0x1d   : > { %p442_p0 = por %p441_p9, %p440_p10 }
  0x1f   : > { %p443_p1 = pnand %p442_p0, %p436_p7 }
  0x21   : > { %446 = shalt.err (!%p443_p1)
}
  0x22   : > { %s447_s17 = scalar_lea.vmem %s622_s3, 256  ;;  %s530_s18 = smov [#allocation3]  }
  0x23   : > { %p448_p2 = scmp.ne.s32.totalorder %s622_s3, %s447_s17  ;;  %s452_s20 = sshll.u32 %s530_s18, 4  ;;  %s453_s20 = int_to_ptr.vmem [resolvable:$false] %s452_s20 }
  0x24   : > { %s454_s24 = scalar_lea.vmem %s453_s20, 512  ;;  %p455_p11 = scmp.lt.s32.totalorder %s622_s3, %s453_s20 }
  0x25   : > { %p450_p4 = pnand %p448_p2, %p434_p3  ;;  %p456_p5 = scmp.lt.s32.totalorder %s454_s24, %s447_s17 }
  0x27   : > { %p451_p12 = pneg %p450_p4  ;;  %p457_p8 = por %p456_p5, %p455_p11 }
  0x29   : > { %p458_p9 = pnand %p457_p8, %p451_p12 }
  0x2b   : > { %461 = shalt.err (!%p458_p9)
}
  0x2c   : > { %388 = dma.hbm_to_vmem [thread:$0]  (!%p618_p13), %s614_s29, 256, %s622_s3, %s114_s5  }
  0x2d   : > { %p728_p0 = scmp.lt.s32.totalorder %s528_s14, 3  ;;  %p729_p1 = scmp.ge.s32.totalorder %s528_s14, 1 }
  0x2f   : > { %p131_p3 = pnand %p729_p1, %p728_p0 }
  0x30   : > { %s656_s25 = sand.u32 (!%p131_p3), 1, %s520_s12  }
  0x31   : > { %134 = sbr.rel (%p131_p3) target bundleno = 827 (0x33b), region = 28  ;;  %s370_s26 = sshll.u32 (!%p131_p3), %s656_s25, 4 }
  0x32   : > { %s137_s27 = scalar_lea.sflag (!%p131_p3), [#allocation4], %s656_s25  ;;  %s140_s28 = scalar_lea.vmem (!%p131_p3), [#allocation3], %s370_s26 }
  0x38   : > { %507 = dma.done.wait (%p594_p6), %s137_s27, 256  }
  0x39   : > { %509 = vsyncadd (%p594_p6), %s137_s27, 4294967040  ;;  %v163_v0 = vld [vmem:[%s140_s28 + $0x8] sm:$0xff]  ;;  %v162_v1 = vld [vmem:[%s140_s28] sm:$0xff]  ;;  %vm206_vm0 = vcmask 64512   ;;  %vm222_vm1 = vcmask 1043456   ;;  %v531_v15 = vmov 0  }
  0x3a   : > { %v165_v2 = vpack.c.bf16 %v163_v0, %v163_v0  ;;  %v164_v3 = vpack.c.bf16 %v162_v1, %v162_v1  ;;  %261 = vmatprep.mubr.bf16.mxu1 %v531_v15  ;;  %s270_s21 = sld [smem:[#allocation2]]  ;;  %s380_s29 = sshll.u32 %s572_s0, 8 }
  0x3b   : > { %s160_s30 = scalar_lea.vmem [#allocation6], %s370_s26  ;;  %s675_s6 = scalar_lea.hbm %s721_s2, %s380_s29 }
  0x3c   : > { %166 = vmatprep.subr.bf16.mxu0 %v165_v2  ;;  %198 = vmatprep.mubr.bf16.mxu0 %v165_v2  ;;  %v224_v14 = vsel %vm222_vm1, %v164_v3, 0  ;;  %s293_s3 = sshll.u32 %s160_s30, 4  ;;  %s279_s0 = scalar_lea.sflag [#allocation5], %s656_s25  ;;  %s677_s3 = int_to_ptr.vmem [resolvable:$true] %s293_s3 }
  0x3d   : > { %167 = vmatpush1.bf16.xpose.msra.mxu0 %v164_v3  ;;  %372 = vmatprep.subr.msk.bf16.mxu1 %vm222_vm1, %v165_v2  ;;  %s462_s7 = scalar_lea.vmem %s677_s3, 256  ;;  %p730_p11 = scmp.ne.s32.totalorder %s725_s22, 0 }
  0x3e   : > { %230 = vmatpush1.bf16.msra.mxu1 %v224_v14  ;;  %p463_p6 = scmp.ne.s32.totalorder %s677_s3, %s462_s7  ;;  %s532_s8 = smov [#allocation6]  }
  0x3f   : > { %s466_s9 = sshll.u32 %s532_s8, 4  ;;  %s467_s9 = int_to_ptr.vmem [resolvable:$false] %s466_s9 }
  0x40   : > { %v271_v20 = vstv %s270_s21  ;;  %p464_p12 = pnand %p463_p6, %p730_p11  ;;  %s468_s10 = scalar_lea.vmem %s467_s9, 512 }
  0x41   : > { %p469_p7 = scmp.lt.s32.totalorder %s677_s3, %s467_s9  ;;  %p470_p10 = scmp.lt.s32.totalorder %s468_s10, %s462_s7 }
  0x42   : > { %p465_p13 = pneg %p464_p12 }
  0x43   : > { %p471_p2 = por %p470_p10, %p469_p7 }
  0x44   : > { %199 = vmatmul.mubr.bf16.vlgmr.msra.gmra.mrb[0].mxu0 %v164_v3 }
  0x45   : > { %p472_p4 = pnand %p471_p2, %p465_p13 }
 0x117   : > { %v200_v4 = vpop.f32.mrb[0].mxu0 }
 0x118   : > { %v202_v5 = vpop.f32.mrb[1].mxu0  ;;  %v207_v6 = vsel %vm206_vm0, %v200_v4, -inf }
 0x119   : > { %208 = vmax.xlane.f32.xlu0 %v207_v6  ;;  %v203_v7 = vpop.f32.mrb[2].mxu0 }
 0x11a   : > { %v204_v8 = vpop.f32.mrb[3].mxu0 }
 0x1a6   : > { %v209_v9 = vpop.xlane.xlu0 %208 }
 0x1a7   : > { %v210_v10 = vsub.f32 %v200_v4, %v209_v9 }
 0x1a9   : > { %v211_v11 = vmul.f32 1.442695, %v210_v10 }
 0x1ab   : > { %428 = vpow2.f32 %v211_v11 }
 0x1b5   : > { %v429_v12 = vpop.eup %428 }
 0x1b6   : > { %v213_v13 = vsel %vm206_vm0, %v429_v12, 0.0 }
 0x1b7   : > { %214 = vadd.xlane.f32.xlu0 %v213_v13 }
 0x244   : > { %v215_v16 = vpop.xlane.xlu0 %214 }
 0x245   : > { %430 = vrcp.f32 %v215_v16 }
 0x24f   : > { %v431_v17 = vpop.eup %430 }
 0x250   : > { %v217_v18 = vmul.f32 %v431_v17, %v429_v12 }
 0x252   : > { %v218_v19 = vpack.c.bf16 %v217_v18, %v217_v18 }
 0x254   : > { %373 = vmatmul.mubr.msk.bf16.vlgmr.msra.gmra.mrb[0].mxu1 %vm206_vm0, %v218_v19 }
 0x327   : > { %v263_v21 = vpop.f32.mrb[0].mxu1 }
 0x328   : > { %v272_v22 = vmul.f32 %v271_v20, %v263_v21  ;;  %v265_v23 = vpop.f32.mrb[1].mxu1 }
 0x329   : > { %v273_v24 = vmul.f32 %v271_v20, %v265_v23  ;;  %v267_v25 = vpop.f32.mrb[2].mxu1 }
 0x32a   : > { %v274_v26 = vadd.f32 %v272_v22, %v162_v1  ;;  %v268_v27 = vpop.f32.mrb[3].mxu1 }
 0x32b   : > { %v275_v28 = vadd.f32 %v273_v24, %v163_v0 }
 0x32c   : > { %276 = vst [vmem:[%s160_s30] sm:$0xff] %v274_v26 }
 0x32d   : > { %277 = vst [vmem:[%s160_s30 + $0x8] sm:$0xff] %v275_v28 }
 0x32e   : > { %475 = shalt.err (!%p472_p4)
}
 0x32f   : > { %s476_s15 = scalar_lea.hbm %s675_s6, 256  ;;  %s480_s20 = scalar_lea.hbm %s721_s2, 512 }
 0x330   : > { %p477_p5 = scmp.ne.s32.totalorder %s675_s6, %s476_s15  ;;  %p481_p0 = scmp.lt.u32.totalorder %s675_s6, %s721_s2 }
 0x331   : > { %p482_p1 = scmp.lt.u32.totalorder %s480_s20, %s476_s15  ;;  %p484_p6 = scmp.lt.u32.totalorder %s476_s15, %s675_s6 }
 0x332   : > { %p478_p8 = pnand %p477_p5, %p730_p11 }
 0x333   : > { %p483_p3 = por %p482_p1, %p481_p0 }
 0x334   : > { %p479_p9 = pneg %p478_p8 }
 0x335   : > { %p485_p12 = por %p484_p6, %p483_p3 }
 0x337   : > { %p486_p13 = pnand %p485_p12, %p479_p9 }
 0x339   : > { %489 = shalt.err (!%p486_p13)
}
 0x33a   : > { %383 = dma.vmem_to_hbm [thread:$0]  (%p730_p11), %s677_s3, 256, %s675_s6, %s279_s0  }
 0x33b PF: > { %s305_s26 = sand.u32 1, %s516_s11   ;;  %p731_p7 = scmp.ne.s32.totalorder %s726_s23, 0 }
 0x33c   : > { %p732_p10 = scmp.ge.s32.totalorder %s528_s14, 2  ;;  %s306_s27 = scalar_lea.sflag [#allocation5], %s305_s26 }
 0x33e   : > { %p390_p2 = pnand %p732_p10, %p731_p7 }
 0x340   : > { %511 = dma.done.wait (!%p390_p2), %s306_s27, 256  }
 0x341   : > { %513 = vsyncadd (!%p390_p2), %s306_s27, 4294967040  ;;  %p16_p4 = scmp.ge.s32.totalorder %s576_s16, 4   ;;  %s733_s11 = smov %s520_s12 }
 0x342   : > { %s734_s12 = smov %s524_s13  ;;  %s735_s13 = smov %s588_s19 }
 0x343   : > { %s736_s14 = smov %s576_s16  ;;  %18 = sbr.rel (!%p16_p4) target bundleno = 7 (0x7), region = 73 }
 0x34a   :  { %311 = vsyncpa [#allocation4], 1 }
 0x34b   :  { %313 = vsyncpa [#allocation4 + $0x1], 1 }
 0x34c   :  { %314 = vsyncpa [#allocation5], 1 }
 0x34d   :  { %316 = vsyncpa [#allocation5 + $0x1], 1 }

</bundles_post_ra>
